<compile_context>
chip_gen: v5e
topology: v5e:2x2
jax: 0.10.0
libtpu: 0.0.40
codegen_flags: <defaults>
</compile_context>

<pallas_src>
import functools
import math

import jax
import jax.numpy as jnp
from jax import lax
from jax.experimental import pallas as pl
from jax.experimental.pallas import tpu as pltpu


def _ssm_llama_block_kernel(t_ref, x_ref, wf_ref, wo_ref, arec_ref, o_ref, *,
                            seq_len):
    """One grid step: TB whole sequences flattened to R = TB*seq_len rows."""
    R, D = x_ref.shape
    x = x_ref[...]                       # [R, D] bf16
    t = t_ref[...]                       # [R, 1] int32 in-sequence positions

    # Single fused projection: [Wq*(1/sqrt(D)) | Wk | Wv | Wrec] concatenated in
    # the wrapper; slice the result at lane-aligned (multiple-of-128) offsets.
    proj = jnp.dot(x, wf_ref[...], preferred_element_type=jnp.float32)   # [R, 4D]
    qb = proj[:, 0 * D:1 * D].astype(jnp.bfloat16)   # score scale already folded
    kb = proj[:, 1 * D:2 * D].astype(jnp.bfloat16)
    vb = proj[:, 2 * D:3 * D].astype(jnp.bfloat16)
    u = proj[:, 3 * D:4 * D]                         # recurrence drive, f32

    # Causal attention on flattened rows with a block-diagonal mask:
    # row r (= b*S + t_r) may attend to col c iff 0 <= r - c <= t_r
    # (same sequence and not in the future).
    # TODO(synk): confirm via pl.lower_as_mlir that this ((1,),(1,)) contraction
    # lowers without an XLU transpose of kb; for long S replace the dense (R,R)
    # scores with a flash-style KV-tiled online softmax (KV tile >= 128).
    s = lax.dot_general(qb, kb, (((1,), (1,)), ((), ())),
                        preferred_element_type=jnp.float32)              # [R, R]
    diff = (lax.broadcasted_iota(jnp.int32, (R, R), 0)
            - lax.broadcasted_iota(jnp.int32, (R, R), 1))
    s = jnp.where((diff >= 0) & (diff <= t), s, -jnp.inf)
    m = jnp.max(s, axis=-1, keepdims=True)
    p = jnp.exp(s - m)
    l = jnp.sum(p, axis=-1, keepdims=True)
    attn = jnp.dot(p.astype(jnp.bfloat16), vb,
                   preferred_element_type=jnp.float32)                   # [R, D]
    # Normalize the (R, D) accumulator, not the (R, R) scores; EUP reciprocal.
    # (Switch to exact division if bit-tight parity against a framework ref is needed.)
    attn = attn * pl.reciprocal(l, approx=True)

    # recurrence_module: diagonal linear SSM h_t = a ⊙ h_{t-1} + u_t computed as
    # a vectorized ceil(log2(S))-step prefix scan.  pltpu.roll matches jnp.roll
    # (rolled[r] = h[r - d]); rows with in-sequence position t < d are masked so
    # nothing leaks across sequence boundaries (validated in __main__).
    a = arec_ref[...]                                                    # [1, D]
    h = u
    decay = a                        # holds a**d for the current shift distance d
    d = 1
    while d < seq_len:               # static Python loop: unrolled log2(S) steps
        rolled = pltpu.roll(h, shift=d, axis=0)
        h = h + decay * jnp.where(t >= d, rolled, 0.0)
        decay = decay * decay
        d *= 2

    y = (attn + h).astype(jnp.bfloat16)                                  # [R, D]
    out = jnp.dot(y, wo_ref[...], preferred_element_type=jnp.float32)
    o_ref[...] = out.astype(o_ref.dtype)                                 # bf16 store


def _pick_batch_tile(batch, seq_len, max_rows=128):
    """Largest divisor of `batch` whose row count (tb*seq_len) fits max_rows."""
    tb = min(batch, max(1, max_rows // seq_len))
    while batch % tb:
        tb -= 1
    return tb


def trainer_model_forward(x, params):
    """TrainerModel.forward: delegates to the (synthetic) inner model kernel."""
    B, S, D = x.shape
    scale = 1.0 / math.sqrt(D)

    # Fold the low-rank adapters (query/key/value_up_proj) and the 1/sqrt(D)
    # score scale into the base weights, then concatenate [Wq|Wk|Wv|Wrec] so the
    # kernel does ONE projection matmul.  bf16 weights/activations in HBM/VMEM,
    # f32 accumulation on the MXU.
    wq = (params["wq"] + params["aq"] @ params["bq"]) * scale
    wk = params["wk"] + params["ak"] @ params["bk"]
    wv = params["wv"] + params["av"] @ params["bv"]
    w_fused = jnp.concatenate([wq, wk, wv, params["wrec"]], axis=1).astype(jnp.bfloat16)
    wo = params["wo"].astype(jnp.bfloat16)
    arec = params["arec"].astype(jnp.float32)

    # Flatten batch*seq into rows in the wrapper (free XLA reshape), so the
    # kernel needs no in-kernel reshapes; each grid step gets TB*S MXU rows.
    TB = _pick_batch_tile(B, S)
    R = TB * S
    grid = (B // TB,)
    xb = x.astype(jnp.bfloat16).reshape(B * S, D)
    # Per-row in-sequence position, drives the causal/segment masks.
    t_ids = jnp.tile(jnp.arange(S, dtype=jnp.int32), B).reshape(B * S, 1)

    def const_spec(shape):
        # Grid-invariant operands (constant index_map -> fetched once).
        # TODO(synk): at large D / long grids, single-buffer these via
        # pipeline_mode=pl.Buffered(1) to halve weight VMEM (matters on v7x).
        return pl.BlockSpec(shape, lambda i: (0, 0))

    in_specs = [
        pl.BlockSpec((R, 1), lambda i: (i, 0)),      # in-sequence positions
        pl.BlockSpec((R, D), lambda i: (i, 0)),      # activations
        const_spec((D, 4 * D)),                      # fused Wq|Wk|Wv|Wrec
        const_spec((D, D)),                          # Wo
        const_spec((1, D)),                          # recurrence decay a
    ]

    # VMEM budget from the actual (double-buffered) footprint, capped below the
    # physical capacity (64 MiB on v7x; v5e/v6e have 128 MiB).
    w_bytes = (4 * D * D + D * D) * 2 + D * 4
    io_bytes = R * (2 * D * 2 + 4)
    footprint = 2 * (w_bytes + io_bytes) + (4 << 20)
    try:
        vmem_cap = pltpu.get_tpu_info().vmem_capacity_bytes
    except Exception:
        vmem_cap = 64 << 20
    vmem_limit = int(min(vmem_cap - (8 << 20), max(footprint, 16 << 20)))

    out_flat = pl.pallas_call(
        functools.partial(_ssm_llama_block_kernel, seq_len=S),
        out_shape=jax.ShapeDtypeStruct((B * S, D), jnp.bfloat16),
        grid_spec=pltpu.PrefetchScalarGridSpec(
            num_scalar_prefetch=0,
            grid=grid,
            in_specs=in_specs,
            out_specs=pl.BlockSpec((R, D), lambda i: (i, 0)),
        ),
        compiler_params=pltpu.CompilerParams(
            # Grid steps are independent -> megacore-shardable on v7x; on
            # v5e/v6e (1 TensorCore) the win is the large per-step row count.
            dimension_semantics=("parallel",),
            vmem_limit_bytes=vmem_limit),
    )(t_ids, xb, w_fused, wo, arec)
    return out_flat.reshape(B, S, D)


def reference_forward(x, params):
    """Pure-JAX f32 reference (exact softmax, serial recurrence) for validation."""
    B, S, D = x.shape
    scale = 1.0 / math.sqrt(D)
    wq = params["wq"] + params["aq"] @ params["bq"]
    wk = params["wk"] + params["ak"] @ params["bk"]
    wv = params["wv"] + params["av"] @ params["bv"]
    q = (x @ wq) * scale
    k = x @ wk
    v = x @ wv
    s = jnp.einsum("bqd,bkd->bqk", q, k)
    causal = jnp.tril(jnp.ones((S, S), bool))
    s = jnp.where(causal, s, -jnp.inf)
    attn = jnp.einsum("bqk,bkd->bqd", jax.nn.softmax(s, axis=-1), v)
    u = x @ params["wrec"]
    a = params["arec"]                               # (1, D)
    h = jnp.zeros((B, D), jnp.float32)
    hs = []
    for t in range(S):                               # serial scan (ground truth)
        h = a * h + u[:, t, :]
        hs.append(h)
    return (attn + jnp.stack(hs, axis=1)) @ params["wo"]


def init_params(key, D, r):
    ks = jax.random.split(key, 12)
    n = lambda k, shape: 0.02 * jax.random.normal(k, shape, jnp.float32)
    return {
        "wq": n(ks[0], (D, D)), "wk": n(ks[1], (D, D)),
        "wv": n(ks[2], (D, D)), "wo": n(ks[3], (D, D)),
        "aq": n(ks[4], (D, r)), "bq": n(ks[5], (r, D)),
        "ak": n(ks[6], (D, r)), "bk": n(ks[7], (r, D)),
        "av": n(ks[8], (D, r)), "bv": n(ks[9], (r, D)),
        "wrec": n(ks[10], (D, D)),
        # per-channel decay in (0, 1)
        "arec": jax.nn.sigmoid(jax.random.normal(ks[11], (1, D), jnp.float32)),
    }


if __name__ == "__main__":
    # D = 128 keeps every operand lane-dense; B*S = 16 rows run in one grid step.
    B, S, D, r = 2, 8, 128, 4
    key = jax.random.PRNGKey(0)
    k_params, k_x = jax.random.split(key)
    params = init_params(k_params, D, r)
    x = jax.random.normal(k_x, (B, S, D), jnp.float32)

    y = trainer_model_forward(x, params)
    jax.block_until_ready(y)
    assert y.shape == (B, S, D) and y.dtype == jnp.bfloat16

    y32 = y.astype(jnp.float32)
    assert bool(jnp.isfinite(y32).all())
    # Validate against the f32 reference (covers roll direction, approx
    # reciprocal and the bf16 LoRA fold, within bf16 tolerance).
    max_err = float(jnp.max(jnp.abs(y32 - reference_forward(x, params))))
    assert max_err < 2e-2, f"kernel vs reference mismatch: max abs err {max_err}"
    print("KERNEL_OK")
</pallas_src>

<mosaic_0001>
module attributes {stable_mosaic.version = 11 : i64} {
  func.func @_ssm_llama_block_kernel(%arg0: i32, %arg1: memref<16x1xi32, #tpu.memory_space<vmem>>, %arg2: memref<16x128xbf16, #tpu.memory_space<vmem>>, %arg3: memref<128x512xbf16, #tpu.memory_space<vmem>>, %arg4: memref<128x128xbf16, #tpu.memory_space<vmem>>, %arg5: memref<1x128xf32, #tpu.memory_space<vmem>>, %arg6: memref<16x128xbf16, #tpu.memory_space<vmem>>) attributes {dimension_semantics = [#tpu.dimension_semantics<parallel>], iteration_bounds = array<i64: 1>, scalar_prefetch = 0 : i64, scratch_operands = 0 : i64, tpu.core_type = #tpu.core_type<tc>, window_params = [{transform_indices = @transform_0, window_bounds = array<i64: 16, 1>}, {transform_indices = @transform_1, window_bounds = array<i64: 16, 128>}, {pipeline_mode = #tpu.pipeline_mode<synchronous>, transform_indices = @transform_2, window_bounds = array<i64: 128, 512>}, {pipeline_mode = #tpu.pipeline_mode<synchronous>, transform_indices = @transform_3, window_bounds = array<i64: 128, 128>}, {pipeline_mode = #tpu.pipeline_mode<synchronous>, transform_indices = @transform_4, window_bounds = array<i64: 1, 128>}, {transform_indices = @transform_5, window_bounds = array<i64: 16, 128>}]} {
    %c0 = arith.constant 0 : index
    %c0_0 = arith.constant 0 : index
    %0 = vector.load %arg2[%c0, %c0_0] : memref<16x128xbf16, #tpu.memory_space<vmem>>, vector<16x128xbf16>
    %c0_1 = arith.constant 0 : index
    %c0_2 = arith.constant 0 : index
    %1 = vector.load %arg1[%c0_1, %c0_2] : memref<16x1xi32, #tpu.memory_space<vmem>>, vector<16x1xi32>
    %c0_3 = arith.constant 0 : index
    %c0_4 = arith.constant 0 : index
    %2 = vector.load %arg3[%c0_3, %c0_4] : memref<128x512xbf16, #tpu.memory_space<vmem>>, vector<128x512xbf16>
    %cst = arith.constant dense<0.000000e+00> : vector<16x512xf32>
    %3 = tpu.matmul %0, %2, %cst {dimension_numbers = #tpu.dot_dimension_numbers<[1], [0], [0], [1], [0, 0, 1, 1], [], []>} : vector<16x128xbf16>, vector<128x512xbf16>, vector<16x512xf32> -> vector<16x512xf32>
    %4 = vector.extract_strided_slice %3 {offsets = [0, 0], sizes = [16, 128], strides = [1, 1]} : vector<16x512xf32> to vector<16x128xf32>
    %5 = arith.truncf %4 : vector<16x128xf32> to vector<16x128xbf16>
    %6 = vector.extract_strided_slice %3 {offsets = [0, 128], sizes = [16, 128], strides = [1, 1]} : vector<16x512xf32> to vector<16x128xf32>
    %7 = arith.truncf %6 : vector<16x128xf32> to vector<16x128xbf16>
    %8 = vector.extract_strided_slice %3 {offsets = [0, 256], sizes = [16, 128], strides = [1, 1]} : vector<16x512xf32> to vector<16x128xf32>
    %9 = arith.truncf %8 : vector<16x128xf32> to vector<16x128xbf16>
    %10 = vector.extract_strided_slice %3 {offsets = [0, 384], sizes = [16, 128], strides = [1, 1]} : vector<16x512xf32> to vector<16x128xf32>
    %cst_5 = arith.constant dense<0.000000e+00> : vector<16x16xf32>
    %11 = tpu.matmul %5, %7, %cst_5 {dimension_numbers = #tpu.dot_dimension_numbers<[1], [1], [0], [0], [0, 0, 1, 0], [], []>} : vector<16x128xbf16>, vector<16x128xbf16>, vector<16x16xf32> -> vector<16x16xf32>
    %12 = tpu.iota {dimensions = array<i32: 0>} : vector<16x16xi32>
    %13 = tpu.iota {dimensions = array<i32: 1>} : vector<16x16xi32>
    %14 = arith.subi %12, %13 : vector<16x16xi32>
    %c0_i32 = arith.constant 0 : i32
    %15 = vector.broadcast %c0_i32 : i32 to vector<16x16xi32>
    %16 = arith.cmpi sge, %14, %15 : vector<16x16xi32>
    %17 = vector.broadcast %1 : vector<16x1xi32> to vector<16x16xi32>
    %18 = arith.cmpi sle, %14, %17 : vector<16x16xi32>
    %19 = arith.andi %16, %18 : vector<16x16xi1>
    %cst_6 = arith.constant 0xFF800000 : f32
    %20 = vector.broadcast %cst_6 : f32 to vector<16x16xf32>
    %21 = arith.select %19, %11, %20 : vector<16x16xi1>, vector<16x16xf32>
    %cst_7 = arith.constant dense<0xFF800000> : vector<16xf32>
    %22 = vector.multi_reduction <maximumf>, %21, %cst_7 [1] : vector<16x16xf32> to vector<16xf32>
    %23 = vector.shape_cast %22 : vector<16xf32> to vector<16x1xf32>
    %24 = vector.broadcast %23 : vector<16x1xf32> to vector<16x16xf32>
    %25 = arith.subf %21, %24 : vector<16x16xf32>
    %26 = math.exp %25 : vector<16x16xf32>
    %cst_8 = arith.constant dense<0.000000e+00> : vector<16xf32>
    %27 = vector.multi_reduction <add>, %26, %cst_8 [1] : vector<16x16xf32> to vector<16xf32>
    %28 = vector.shape_cast %27 : vector<16xf32> to vector<16x1xf32>
    %29 = arith.truncf %26 : vector<16x16xf32> to vector<16x16xbf16>
    %cst_9 = arith.constant dense<0.000000e+00> : vector<16x128xf32>
    %30 = tpu.matmul %29, %9, %cst_9 {dimension_numbers = #tpu.dot_dimension_numbers<[1], [0], [0], [1], [0, 0, 1, 1], [], []>} : vector<16x16xbf16>, vector<16x128xbf16>, vector<16x128xf32> -> vector<16x128xf32>
    %31 = tpu.reciprocal %28 {approx = true} : vector<16x1xf32> -> vector<16x1xf32>
    %32 = vector.broadcast %31 : vector<16x1xf32> to vector<16x128xf32>
    %33 = arith.mulf %30, %32 : vector<16x128xf32>
    %c0_10 = arith.constant 0 : index
    %c0_11 = arith.constant 0 : index
    %34 = vector.load %arg5[%c0_10, %c0_11] : memref<1x128xf32, #tpu.memory_space<vmem>>, vector<1x128xf32>
    %c1_i32 = arith.constant 1 : i32
    %35 = tpu.dynamic_rotate %10 by %c1_i32 dim 0 : vector<16x128xf32>, i32 -> vector<16x128xf32>
    %c1_i32_12 = arith.constant 1 : i32
    %36 = vector.broadcast %c1_i32_12 : i32 to vector<16x1xi32>
    %37 = arith.cmpi sge, %1, %36 : vector<16x1xi32>
    %cst_13 = arith.constant 0.000000e+00 : f32
    %38 = vector.shape_cast %37 : vector<16x1xi1> to vector<16x1xi1>
    %39 = vector.broadcast %38 : vector<16x1xi1> to vector<16x128xi1>
    %40 = vector.broadcast %cst_13 : f32 to vector<16x128xf32>
    %41 = arith.select %39, %35, %40 : vector<16x128xi1>, vector<16x128xf32>
    %42 = vector.broadcast %34 : vector<1x128xf32> to vector<16x128xf32>
    %43 = arith.mulf %42, %41 : vector<16x128xf32>
    %44 = arith.addf %10, %43 : vector<16x128xf32>
    %45 = arith.mulf %34, %34 : vector<1x128xf32>
    %c2_i32 = arith.constant 2 : i32
    %46 = tpu.dynamic_rotate %44 by %c2_i32 dim 0 : vector<16x128xf32>, i32 -> vector<16x128xf32>
    %c2_i32_14 = arith.constant 2 : i32
    %47 = vector.broadcast %c2_i32_14 : i32 to vector<16x1xi32>
    %48 = arith.cmpi sge, %1, %47 : vector<16x1xi32>
    %cst_15 = arith.constant 0.000000e+00 : f32
    %49 = vector.shape_cast %48 : vector<16x1xi1> to vector<16x1xi1>
    %50 = vector.broadcast %49 : vector<16x1xi1> to vector<16x128xi1>
    %51 = vector.broadcast %cst_15 : f32 to vector<16x128xf32>
    %52 = arith.select %50, %46, %51 : vector<16x128xi1>, vector<16x128xf32>
    %53 = vector.broadcast %45 : vector<1x128xf32> to vector<16x128xf32>
    %54 = arith.mulf %53, %52 : vector<16x128xf32>
    %55 = arith.addf %44, %54 : vector<16x128xf32>
    %56 = arith.mulf %45, %45 : vector<1x128xf32>
    %c4_i32 = arith.constant 4 : i32
    %57 = tpu.dynamic_rotate %55 by %c4_i32 dim 0 : vector<16x128xf32>, i32 -> vector<16x128xf32>
    %c4_i32_16 = arith.constant 4 : i32
    %58 = vector.broadcast %c4_i32_16 : i32 to vector<16x1xi32>
    %59 = arith.cmpi sge, %1, %58 : vector<16x1xi32>
    %cst_17 = arith.constant 0.000000e+00 : f32
    %60 = vector.shape_cast %59 : vector<16x1xi1> to vector<16x1xi1>
    %61 = vector.broadcast %60 : vector<16x1xi1> to vector<16x128xi1>
    %62 = vector.broadcast %cst_17 : f32 to vector<16x128xf32>
    %63 = arith.select %61, %57, %62 : vector<16x128xi1>, vector<16x128xf32>
    %64 = vector.broadcast %56 : vector<1x128xf32> to vector<16x128xf32>
    %65 = arith.mulf %64, %63 : vector<16x128xf32>
    %66 = arith.addf %55, %65 : vector<16x128xf32>
    %67 = arith.addf %33, %66 : vector<16x128xf32>
    %68 = arith.truncf %67 : vector<16x128xf32> to vector<16x128xbf16>
    %c0_18 = arith.constant 0 : index
    %c0_19 = arith.constant 0 : index
    %69 = vector.load %arg4[%c0_18, %c0_19] : memref<128x128xbf16, #tpu.memory_space<vmem>>, vector<128x128xbf16>
    %cst_20 = arith.constant dense<0.000000e+00> : vector<16x128xf32>
    %70 = tpu.matmul %68, %69, %cst_20 {dimension_numbers = #tpu.dot_dimension_numbers<[1], [0], [0], [1], [0, 0, 1, 1], [], []>} : vector<16x128xbf16>, vector<128x128xbf16>, vector<16x128xf32> -> vector<16x128xf32>
    %71 = arith.truncf %70 : vector<16x128xf32> to vector<16x128xbf16>
    %c0_21 = arith.constant 0 : index
    %c0_22 = arith.constant 0 : index
    %72 = vector.load %arg6[%c0_21, %c0_22] : memref<16x128xbf16, #tpu.memory_space<vmem>>, vector<16x128xbf16>
    tpu.vector_store %arg6[%c0_21, %c0_22], %71 {strides = array<i32>} : memref<16x128xbf16, #tpu.memory_space<vmem>>, vector<16x128xbf16>,
    return
  }
  func.func @transform_0(%arg0: i32) -> (i32, i32) {
    %c0_i32 = arith.constant 0 : i32
    %c0_i32_0 = arith.constant 0 : i32
    return %arg0, %c0_i32 : i32, i32
  }
  func.func @transform_1(%arg0: i32) -> (i32, i32) {
    %c0_i32 = arith.constant 0 : i32
    %c0_i32_0 = arith.constant 0 : i32
    return %arg0, %c0_i32 : i32, i32
  }
  func.func @transform_2(%arg0: i32) -> (i32, i32) {
    %c0_i32 = arith.constant 0 : i32
    %c0_i32_0 = arith.constant 0 : i32
    %c0_i32_1 = arith.constant 0 : i32
    return %c0_i32, %c0_i32_0 : i32, i32
  }
  func.func @transform_3(%arg0: i32) -> (i32, i32) {
    %c0_i32 = arith.constant 0 : i32
    %c0_i32_0 = arith.constant 0 : i32
    %c0_i32_1 = arith.constant 0 : i32
    return %c0_i32, %c0_i32_0 : i32, i32
  }
  func.func @transform_4(%arg0: i32) -> (i32, i32) {
    %c0_i32 = arith.constant 0 : i32
    %c0_i32_0 = arith.constant 0 : i32
    %c0_i32_1 = arith.constant 0 : i32
    return %c0_i32, %c0_i32_0 : i32, i32
  }
  func.func @transform_5(%arg0: i32) -> (i32, i32) {
    %c0_i32 = arith.constant 0 : i32
    %c0_i32_0 = arith.constant 0 : i32
    return %arg0, %c0_i32 : i32, i32
  }
}

</mosaic_0001>

<bundles_post_ra>
// kernel: tpu_custom_call.1
= control target key start
LH: loop header
LB: loop body
LE: loop exit
PB: predicated region body
PF: predicated region fallthrough
CT: control target
= control target key end

     0   :  { %10 = vsyncpa [#allocation3], 0  ;;  %s993_s0 = inlined_call_operand.vmem [shape: s32[16,1], index: 0, kind: input, shape index: {}]   ;;  %s994_s1 = inlined_call_operand.vmem [shape: bf16[16,128], index: 1, kind: input, shape index: {}]   ;;  %s995_s2 = inlined_call_operand.hbm [shape: bf16[128,512], index: 2, kind: input, shape index: {}]   ;;  %s996_s3 = inlined_call_operand.hbm [shape: bf16[128,128], index: 3, kind: input, shape index: {}]   ;;  %s997_s4 = inlined_call_operand.vmem [shape: f32[1,128], index: 4, kind: input, shape index: {}]   ;;  %s998_s5 = inlined_call_operand.hbm [shape: bf16[16,128], index: 5, kind: output, shape index: {}]  }
   0x1   :  { %11 = vsyncpa [#allocation6], 0 }
   0x2   :  { %12 = vsyncpa [#allocation4], 0  ;;  %s21_s20 = sshll.u32 %s995_s2, 4  ;;  %s886_s21 = smov [#allocation2]   ;;  %s22_s20 = int_to_ptr.hbm [resolvable:$true] %s21_s20 }
   0x3   :  { %s23_s22 = sshll.u32 %s886_s21, 4  ;;  %s34_s25 = sshll.u32 %s996_s3, 4  ;;  %s24_s22 = int_to_ptr.vmem [resolvable:$true] %s23_s22  ;;  %s35_s25 = int_to_ptr.hbm [resolvable:$true] %s34_s25 }
   0x4   :  { %s887_s26 = smov 256   ;;  %s888_s27 = smov 16  }
   0x5   :  { %29 = dma.hbm_to_vmem [thread:$0]  %s22_s20, 4096, %s24_s22, [#allocation3], %s887_s26, %s887_s26, %s888_s27  }
   0x6   :  { %s889_s28 = smov [#allocation5]   ;;  %s890_s30 = smov 64  }
   0x7   :  { %s36_s29 = sshll.u32 %s889_s28, 4  ;;  %s891_s6 = smov 4   ;;  %s37_s29 = int_to_ptr.vmem [resolvable:$true] %s36_s29 }
   0x8   :  { %42 = dma.hbm_to_vmem [thread:$0]  %s35_s25, 1024, %s37_s29, [#allocation6], %s890_s30, %s890_s30, %s891_s6  }
   0x9   :  { %880 = dma.done.wait [#allocation3], 4096  }
   0xa   :  { %881 = vsyncadd [#allocation3], 4294963200 }
   0xb   :  { %882 = dma.done.wait [#allocation6], 1024  }
   0xc   :  { %883 = vsyncadd [#allocation6], 4294966272  ;;  %v771_v0 = vld [vmem:[#allocation2 + $0xe4] sm:$0xf]  ;;  %v697_v1 = vld [vmem:[#allocation2 + $0xf0] sm:$0xf0] }
   0xd   :  { %v767_v2 = vld [vmem:[#allocation2 + $0xc4] sm:$0xf]  ;;  %v700_v3 = vor.u32 %v771_v0, %v697_v1  ;;  %v681_v4 = vld [vmem:[#allocation2 + $0xd0] sm:$0xf0]  ;;  %v695_v5 = vld [vmem:[#allocation2 + $0xe0] sm:$0xf] }
   0xe   :  { %v773_v6 = vld [vmem:[#allocation2 + $0xec] sm:$0xf0]  ;;  %v679_v8 = vld [vmem:[#allocation2 + $0xc0] sm:$0xf]  ;;  %v684_v9 = vor.u32 %v767_v2, %v681_v4  ;;  %v763_v11 = vld [vmem:[#allocation2 + $0xa4] sm:$0xf] }
   0xf   :  { %v696_v7 = vor.u32 %v773_v6, %v695_v5  ;;  %270 = vmatpush.bf16.msra.mxu1 %v700_v3  ;;  %v769_v10 = vld [vmem:[#allocation2 + $0xcc] sm:$0xf0]  ;;  %v665_v12 = vld [vmem:[#allocation2 + $0xb0] sm:$0xf0]  ;;  %v663_v14 = vld [vmem:[#allocation2 + $0xa0] sm:$0xf] }
  0x10   :  { %v680_v13 = vor.u32 %v769_v10, %v679_v8  ;;  %v765_v15 = vld [vmem:[#allocation2 + $0xac] sm:$0xf0]  ;;  %v668_v16 = vor.u32 %v763_v11, %v665_v12  ;;  %v759_v17 = vld [vmem:[#allocation2 + $0x84] sm:$0xf]  ;;  %v649_v18 = vld [vmem:[#allocation2 + $0x90] sm:$0xf0] }
  0x11   :  { %256 = vmatpush.bf16.msra.mxu0 %v696_v7  ;;  %v664_v19 = vor.u32 %v765_v15, %v663_v14  ;;  %v647_v20 = vld [vmem:[#allocation2 + $0x80] sm:$0xf]  ;;  %v761_v21 = vld [vmem:[#allocation2 + $0x8c] sm:$0xf0]  ;;  %v652_v22 = vor.u32 %v759_v17, %v649_v18  ;;  %v772_v23 = vld [vmem:[#allocation2 + $0xec] sm:$0xf] }
  0x12   :  { %v705_v24 = vld [vmem:[#allocation2 + $0xf8] sm:$0xf0]  ;;  %v768_v25 = vld [vmem:[#allocation2 + $0xcc] sm:$0xf]  ;;  %v755_v26 = vld [vmem:[#allocation2 + $0x64] sm:$0xf]  ;;  %v648_v28 = vor.u32 %v761_v21, %v647_v20 }
  0x13   :  { %271 = vmatpush.bf16.msra.mxu1 %v684_v9  ;;  %v633_v27 = vld [vmem:[#allocation2 + $0x70] sm:$0xf0]  ;;  %v708_v29 = vor.u32 %v772_v23, %v705_v24  ;;  %v689_v30 = vld [vmem:[#allocation2 + $0xd8] sm:$0xf0]  ;;  %v631_v31 = vld [vmem:[#allocation2 + $0x60] sm:$0xf] }
  0x14   :  { %v757_v32 = vld [vmem:[#allocation2 + $0x6c] sm:$0xf0]  ;;  %v692_v33 = vor.u32 %v768_v25, %v689_v30  ;;  %v636_v34 = vor.u32 %v755_v26, %v633_v27  ;;  %v764_v35 = vld [vmem:[#allocation2 + $0xac] sm:$0xf]  ;;  %v673_v36 = vld [vmem:[#allocation2 + $0xb8] sm:$0xf0] }
  0x15   :  { %257 = vmatpush.bf16.msra.mxu0 %v680_v13  ;;  %298 = vmatpush.bf16.msra.mxu3 %v708_v29  ;;  %v751_v37 = vld [vmem:[#allocation2 + $0x44] sm:$0xf]  ;;  %v617_v38 = vld [vmem:[#allocation2 + $0x50] sm:$0xf0]  ;;  %v632_v39 = vor.u32 %v757_v32, %v631_v31  ;;  %v615_v40 = vld [vmem:[#allocation2 + $0x40] sm:$0xf]  ;;  %v676_v42 = vor.u32 %v764_v35, %v673_v36 }
  0x16   :  { %v753_v41 = vld [vmem:[#allocation2 + $0x4c] sm:$0xf0]  ;;  %v620_v43 = vor.u32 %v751_v37, %v617_v38  ;;  %v760_v44 = vld [vmem:[#allocation2 + $0x8c] sm:$0xf]  ;;  %v657_v45 = vld [vmem:[#allocation2 + $0x98] sm:$0xf0] }
  0x17   :  { %272 = vmatpush.bf16.msra.mxu1 %v668_v16  ;;  %v747_v46 = vld [vmem:[#allocation2 + $0x24] sm:$0xf]  ;;  %v601_v47 = vld [vmem:[#allocation2 + $0x30] sm:$0xf0]  ;;  %v616_v48 = vor.u32 %v753_v41, %v615_v40  ;;  %v599_v49 = vld [vmem:[#allocation2 + $0x20] sm:$0xf]  ;;  %v660_v51 = vor.u32 %v760_v44, %v657_v45  ;;  %v329_v45 = vlaneseq }
  0x18   :  { %v749_v50 = vld [vmem:[#allocation2 + $0x2c] sm:$0xf0]  ;;  %v604_v52 = vor.u32 %v747_v46, %v601_v47  ;;  %v756_v53 = vld [vmem:[#allocation2 + $0x6c] sm:$0xf]  ;;  %v641_v54 = vld [vmem:[#allocation2 + $0x78] sm:$0xf0] }
  0x19   :  { %258 = vmatpush.bf16.msra.mxu0 %v664_v19  ;;  %299 = vmatpush.bf16.msra.mxu3 %v692_v33  ;;  %v743_v55 = vld [vmem:[#allocation2 + $0x4] sm:$0xf]  ;;  %v585_v56 = vld [vmem:[#allocation2 + $0x10] sm:$0xf0]  ;;  %v600_v57 = vor.u32 %v749_v50, %v599_v49  ;;  %v583_v58 = vld [vmem:[#allocation2] sm:$0xf]  ;;  %v644_v60 = vor.u32 %v756_v53, %v641_v54 }
  0x1a   :  { %v745_v59 = vld [vmem:[#allocation2 + $0xc] sm:$0xf0]  ;;  %v588_v61 = vor.u32 %v743_v55, %v585_v56  ;;  %v752_v62 = vld [vmem:[#allocation2 + $0x4c] sm:$0xf]  ;;  %v625_v63 = vld [vmem:[#allocation2 + $0x58] sm:$0xf0] }
  0x1b   :  { %273 = vmatpush.bf16.msra.mxu1 %v652_v22  ;;  %v584_v0 = vor.u32 %v745_v59, %v583_v58  ;;  %v936_v1 = vld [vmem:[%s994_s1] sm:$0xff]  ;;  %v628_v2 = vor.u32 %v752_v62, %v625_v63  ;;  %v748_v3 = vld [vmem:[#allocation2 + $0x2c] sm:$0xf]  ;;  %v609_v4 = vld [vmem:[#allocation2 + $0x38] sm:$0xf0]  ;;  %v892_v9 = vmov 0  }
  0x1c   :  { %v612_v5 = vor.u32 %v748_v3, %v609_v4  ;;  %v744_v6 = vld [vmem:[#allocation2 + $0xc] sm:$0xf]  ;;  %v593_v7 = vld [vmem:[#allocation2 + $0x18] sm:$0xf0]  ;;  %796 = vset.pattern.permute.xlu0 %v892_v9  ;;  %v945_v10 = vld [vmem:[%s993_s0] sm:$0xff]  ;;  %797 = vset.pattern.permute.xlu2 %v892_v9  ;;  %v333_v46 = vand.u32 127, %v329_v45 }
  0x1d   :  { %259 = vmatpush.bf16.msra.mxu0 %v648_v28  ;;  %300 = vmatpush.bf16.msra.mxu3 %v676_v42  ;;  %v596_v8 = vor.u32 %v744_v6, %v593_v7  ;;  %v953_v11 = vld [vmem:[%s993_s0 + $0x8] sm:$0xff]  ;;  %vm397_vm0 = vcmp.ge.s32.totalorder %v945_v10, 1  ;;  %v774_v14 = vld [vmem:[#allocation2 + $0xf4] sm:$0xf0]  ;;  %vm424_vm1 = vcmp.ge.s32.totalorder %v945_v10, 2  ;;  %v963_v47 = vshrl.u32 %v329_v45, 7 }
  0x1e   :  { %339 = vperm.xlu0 %796, %v945_v10   ;;  %798 = vset.pattern.permute.xlu1 %v892_v9  ;;  %v703_v12 = vld [vmem:[#allocation2 + $0xe8] sm:$0xf]  ;;  %v399_v13 = vsel %vm397_vm0, 1, %v892_v9  ;;  %v770_v17 = vld [vmem:[#allocation2 + $0xd4] sm:$0xf0]  ;;  %vm398_vm2 = vcmp.ge.s32.totalorder %v953_v11, 1 }
  0x1f   :  { %274 = vmatpush.bf16.msra.mxu1 %v636_v34  ;;  %402 = vperm.xlu2 %797, %v399_v13   ;;  %v704_v15 = vor.u32 %v774_v14, %v703_v12  ;;  %v687_v16 = vld [vmem:[#allocation2 + $0xc8] sm:$0xf]  ;;  %v766_v20 = vld [vmem:[#allocation2 + $0xb4] sm:$0xf0]  ;;  %v426_v21 = vsel %vm424_vm1, 1, %v892_v9  ;;  %v400_v22 = vsel %vm398_vm2, 1, %v892_v9 }
  0x20   :  { %v688_v18 = vor.u32 %v770_v17, %v687_v16  ;;  %v671_v19 = vld [vmem:[#allocation2 + $0xa8] sm:$0xf]  ;;  %v762_v25 = vld [vmem:[#allocation2 + $0x94] sm:$0xf0]  ;;  %v331_v50 = vadd.s32 8, %v963_v47  ;;  %vm350_vm6 = vcmask 130048  }
  0x21   :  { %260 = vmatpush.bf16.msra.mxu0 %v632_v39  ;;  %301 = vmatpush.bf16.msra.mxu3 %v660_v51  ;;  %v672_v23 = vor.u32 %v766_v20, %v671_v19  ;;  %v655_v24 = vld [vmem:[#allocation2 + $0x88] sm:$0xf]  ;;  %v758_v28 = vld [vmem:[#allocation2 + $0x74] sm:$0xf0]  ;;  %vm425_vm10 = vcmp.ge.s32.totalorder %v953_v11, 2  ;;  %vm451_vm11 = vcmp.ge.s32.totalorder %v945_v10, 4 }
  0x22   :  { %284 = vmatpush.bf16.msra.mxu2 %v704_v15  ;;  %v656_v26 = vor.u32 %v762_v25, %v655_v24  ;;  %v639_v27 = vld [vmem:[#allocation2 + $0x68] sm:$0xf]  ;;  %v754_v33 = vld [vmem:[#allocation2 + $0x54] sm:$0xf0]  ;;  %v427_v59 = vsel %vm425_vm10, 1, %v892_v9  ;;  %vm452_vm12 = vcmp.ge.s32.totalorder %v953_v11, 4 }
  0x23   :  { %275 = vmatpush.bf16.msra.mxu1 %v620_v43  ;;  %v640_v30 = vor.u32 %v758_v28, %v639_v27  ;;  %v623_v32 = vld [vmem:[#allocation2 + $0x48] sm:$0xf]  ;;  %v750_v36 = vld [vmem:[#allocation2 + $0x34] sm:$0xf0]  ;;  %v781_v15 = vld [vmem:[#allocation5 + $0x30] sm:$0xff]  ;;  %vm394_vm13 = vcmp.lt.s32.totalorder %v963_v47, 1 }
  0x24   :  { %v624_v34 = vor.u32 %v754_v33, %v623_v32  ;;  %v607_v35 = vld [vmem:[#allocation2 + $0x28] sm:$0xf]  ;;  %v746_v41 = vld [vmem:[#allocation2 + $0x14] sm:$0xf0]  ;;  %v799_v24 = vld [vmem:[%s997_s4] ss:$0 sm:$0xff] }
  0x25   :  { %261 = vmatpush.bf16.msra.mxu0 %v616_v48  ;;  %302 = vmatpush.bf16.msra.mxu3 %v644_v60  ;;  %v608_v39 = vor.u32 %v750_v36, %v607_v35  ;;  %v591_v40 = vld [vmem:[#allocation2 + $0x8] sm:$0xf]  ;;  %v334_v48 = vsub.s32 %v963_v47, %v333_v46  ;;  %v453_v60 = vsel %vm451_vm11, 1, %v892_v9  ;;  %v782_v13 = vld [vmem:[#allocation5 + $0x38] sm:$0xff]  ;;  %v391_v35 = vld [vmem:[%s997_s4] sm:$0x1] }
  0x26   :  { %342 = vperm.xlu0 %796, %v953_v11   ;;  %285 = vmatpush.bf16.msra.mxu2 %v688_v18  ;;  %v592_v43 = vor.u32 %v746_v41, %v591_v40  ;;  %v780_v17 = vld [vmem:[#allocation5 + $0x28] sm:$0xff]  ;;  %v779_v18 = vld [vmem:[#allocation5 + $0x20] sm:$0xff]  ;;  %v778_v25 = vld [vmem:[#allocation5 + $0x18] sm:$0xff]  ;;  %vm421_vm0 = vcmp.lt.s32.totalorder %v963_v47, 2  ;;  %v418_v40 = vmul.f32 %v391_v35, %v391_v35  ;;  %s893_s4 = smov [#allocation7]   ;;  %s563_s16 = sshll.u32 %s998_s5, 4  ;;  %s564_s16 = int_to_ptr.hbm [resolvable:$true] %s563_s16 }
  0x27   :  { %276 = vmatpush.bf16.msra.mxu1 %v604_v52  ;;  %405 = vperm.xlu2 %797, %v400_v22   ;;  %vm336_vm4 = vcmp.ge.s32.totalorder %v334_v48, 0  ;;  %v335_v52 = vsub.s32 %v331_v50, %v333_v46  ;;  %v776_v33 = vld [vmem:[#allocation5 + $0x8] sm:$0xff]  ;;  %s561_s13 = sshll.u32 %s893_s4, 4  ;;  %s562_s13 = int_to_ptr.vmem [resolvable:$true] %s561_s13 }
  0x29   :  { %262 = vmatpush.bf16.msra.mxu0 %v600_v57  ;;  %303 = vmatpush.bf16.msra.mxu3 %v628_v2  ;;  %vm337_vm8 = vcmp.ge.s32.totalorder %v335_v52, 0 }
  0x2a   :  { %286 = vmatpush.bf16.msra.mxu2 %v672_v23 }
  0x2b   :  { %277 = vmatpush.bf16.msra.mxu1 %v588_v61  ;;  %v454_v61 = vsel %vm452_vm12, 1, %v892_v9 }
  0x2d   :  { %263 = vmatpush.bf16.msra.mxu0 %v584_v0  ;;  %304 = vmatpush.bf16.msra.mxu3 %v612_v5 }
  0x2e   :  { %278 = vmatmul.bf16.vlgmr.msra.gmra.mxu1 %v936_v1  ;;  %429 = vperm.xlu0 %796, %v426_v21  }
  0x2f   :  { %287 = vmatpush.bf16.msra.mxu2 %v656_v26 }
  0x30   :  { %264 = vmatmul.bf16.vlgmr.msra.gmra.mxu0 %v936_v1 }
  0x31   :  { %305 = vmatpush.bf16.msra.mxu3 %v596_v8 }
  0x33   :  { %288 = vmatpush.bf16.msra.mxu2 %v640_v30  ;;  %v777_v30 = vld [vmem:[#allocation5 + $0x10] sm:$0xff] }
  0x34   :  { %306 = vmatmul.bf16.vlgmr.msra.gmra.mxu3 %v936_v1 }
  0x37   :  { %289 = vmatpush.bf16.msra.mxu2 %v624_v34 }
  0x3b   :  { %290 = vmatpush.bf16.msra.mxu2 %v608_v39 }
  0x3f   :  { %291 = vmatpush.bf16.msra.mxu2 %v592_v43 }
  0x42   :  { %292 = vmatmul.bf16.vlgmr.msra.gmra.mxu2 %v936_v1 }
  0x43   :  { %539 = vmatpush.bf16.msrb.mxu2 %v782_v13 }
  0x47   :  { %540 = vmatpush.bf16.msrb.mxu2 %v781_v15 }
  0x4b   :  { %541 = vmatpush.bf16.msrb.mxu2 %v780_v17 }
  0x4f   :  { %542 = vmatpush.bf16.msrb.mxu2 %v779_v18 }
  0x53   :  { %543 = vmatpush.bf16.msrb.mxu2 %v778_v25 }
  0x57   :  { %544 = vmatpush.bf16.msrb.mxu2 %v777_v30 }
  0x5b   :  { %545 = vmatpush.bf16.msrb.mxu2 %v776_v33 }
  0x79   :  { %v403_v14 = vpop.permute.xlu2 %402 }
  0x7a   :  { %vm407_vm14 = vcmp.eq.s32.totalorder %v403_v14, 1 }
  0x81   :  { %v406_v21 = vpop.permute.xlu2 %405 }
  0x82   :  { %vm408_vm15 = vcmp.eq.s32.totalorder %v406_v21, 1 }
  0x90   :  { %v340_v49 = vpop.permute.xlu0 %339 }
  0x91   :  { %vm344_vm3 = vcmp.le.s32.totalorder %v334_v48, %v340_v49 }
  0x92   :  { %vm346_vm5 = vmand %vm336_vm4, %vm344_vm3  ;;  %vm448_vm3 = vcmp.lt.s32.totalorder %v963_v47, 4 }
  0x98   :  { %v343_v55 = vpop.permute.xlu0 %342 }
  0x99   :  { %vm345_vm7 = vcmp.le.s32.totalorder %v335_v52, %v343_v55  ;;  %v445_v55 = vmul.f32 %v418_v40, %v418_v40 }
  0x9a   :  { %vm347_vm9 = vmand %vm337_vm8, %vm345_vm7 }
  0xa0   :  { %v430_v39 = vpop.permute.xlu0 %429 }
  0xa1   :  { %vm434_vm2 = vcmp.eq.s32.totalorder %v430_v39, 1 }
  0xab   :  { %v279_v29 = vpop.f32.mrf.mxu1 }
  0xad   :  { %v265_v31 = vpop.f32.mrf.mxu0 }
  0xb3   :  { %v281_v37 = vpop.f32.mrf.mxu1 }
  0xb4   :  { %v313_v38 = vpack.c.bf16 %v281_v37, %v279_v29 }
  0xb5   :  { %v267_v42 = vpop.f32.mrf.mxu0 }
  0xb6   :  { %322 = vmatpush.bf16.xpose.msrb.mxu0 %v313_v38  ;;  %v312_v44 = vpack.c.bf16 %v267_v42, %v265_v31  ;;  %v775_v38 = vld [vmem:[#allocation5] sm:$0xff] }
  0xb7   :  { %v307_v12 = vpop.f32.mrf.mxu3  ;;  %546 = vmatpush.bf16.msrb.mxu2 %v775_v38 }
  0xb8   :  { %v392_v19 = vrot.slane %v307_v12, 7 }
  0xbd   :  { %323 = vmatmul.bf16.vlgmr.msrb.gmra.mxu0 %v312_v44  ;;  %v439_v44 = vperm.slane %v418_v40, 0 }
  0xbf   :  { %v309_v16 = vpop.f32.mrf.mxu3 }
  0xc0   :  { %v393_v20 = vrot.slane %v309_v16, 7 }
  0xc2   :  { %v395_v22 = vsel %vm394_vm13, %v392_v19, %v393_v20  ;;  %v396_v23 = vsel %vm394_vm13, %v393_v20, %v392_v19 }
  0xc3   :  { %v409_v26 = vsel %vm407_vm14, %v396_v23, 0.0  ;;  %v410_v27 = vsel %vm408_vm15, %v395_v22, 0.0 }
  0xc4   :  { %v414_v28 = vmul.f32 %v799_v24, %v409_v26  ;;  %v415_v29 = vmul.f32 %v799_v24, %v410_v27 }
  0xc5   :  { %v293_v62 = vpop.f32.mrf.mxu2 }
  0xc6   :  { %v417_v31 = vadd.f32 %v415_v29, %v309_v16  ;;  %v416_v32 = vadd.f32 %v414_v28, %v307_v12 }
  0xc8   :  { %v420_v36 = vrot.slane %v417_v31, 6  ;;  %v419_v37 = vrot.slane %v416_v32, 6 }
  0xca   :  { %v422_v41 = vsel %vm421_vm0, %v419_v37, %v420_v36  ;;  %v423_v42 = vsel %vm421_vm0, %v420_v36, %v419_v37 }
  0xcb   :  { %v436_v45 = vsel %vm434_vm2, %v423_v42, 0.0 }
  0xcc   :  { %v441_v49 = vmul.f32 %v439_v44, %v436_v45 }
  0xcd   :  { %v295_v63 = vpop.f32.mrf.mxu2 }
  0xce   :  { %v314_v0 = vpack.c.bf16 %v295_v63, %v293_v62 }
  0xd0   :  { %380 = vmatpush.bf16.msrb.mxu1 %v314_v0 }
 0x13a   :  { %v324_v51 = vpop.f32.mrf.mxu0 }
 0x13b   :  { %v348_v53 = vsel %vm346_vm5, %v324_v51, -inf  ;;  %v443_v51 = vadd.f32 %v441_v49, %v416_v32 }
 0x13c   :  { %v351_v54 = vsel %vm350_vm6, %v348_v53, -inf }
 0x13d   :  { %352 = vmax.xlane.f32.xlu1 %v351_v54  ;;  %v446_v54 = vrot.slane %v443_v51, 4 }
 0x142   :  { %v326_v56 = vpop.f32.mrf.mxu0 }
 0x143   :  { %v349_v57 = vsel %vm347_vm9, %v326_v56, -inf }
 0x144   :  { %v354_v58 = vsel %vm350_vm6, %v349_v57, -inf }
 0x145   :  { %355 = vmax.xlane.f32.xlu1 %v354_v58 }
 0x15e   :  { %432 = vperm.xlu1 %798, %v427_v59  }
 0x166   :  { %456 = vperm.xlu1 %798, %v453_v60   ;;  %v466_v60 = vperm.slane %v445_v55, 0 }
 0x16e   :  { %459 = vperm.xlu1 %798, %v454_v61  }
 0x1b0   :  { %v353_v1 = vpop.xlane.xlu1 %352 }
 0x1b1   :  { %v357_v2 = vsub.f32 %v348_v53, %v353_v1 }
 0x1b3   :  { %v359_v3 = vmul.f32 1.442695, %v357_v2 }
 0x1b5   :  { %800 = vpow2.f32 %v359_v3 }
 0x1b8   :  { %v356_v4 = vpop.xlane.xlu1 %355 }
 0x1b9   :  { %v358_v5 = vsub.f32 %v349_v57, %v356_v4 }
 0x1bb   :  { %v801_v6 = vpop.eup %800  ;;  %v361_v7 = vmul.f32 1.442695, %v358_v5 }
 0x1bc   :  { %v363_v8 = vsel %vm350_vm6, %v801_v6, 0.0 }
 0x1bd   :  { %802 = vpow2.f32 %v361_v7  ;;  %364 = vadd.xlane.f32.xlu2 %v363_v8 }
 0x1c3   :  { %v803_v10 = vpop.eup %802 }
 0x1c4   :  { %v366_v9 = vsel %vm350_vm6, %v803_v10, 0.0  ;;  %v369_v11 = vpack.c.bf16 %v803_v10, %v801_v6 }
 0x1c5   :  { %367 = vadd.xlane.f32.xlu0 %v366_v9 }
 0x1c6   :  { %709 = vmatmul.msk.bf16.vlgmr.msrb.gmra.mxu1 %vm350_vm6, %v369_v11 }
 0x1d0   :  { %v433_v34 = vpop.permute.xlu1 %432 }
 0x1d1   :  { %vm435_vm1 = vcmp.eq.s32.totalorder %v433_v34, 1 }
 0x1d2   :  { %v437_v43 = vsel %vm435_vm1, %v422_v41, 0.0 }
 0x1d3   :  { %v442_v48 = vmul.f32 %v439_v44, %v437_v43 }
 0x1d5   :  { %v444_v50 = vadd.f32 %v442_v48, %v417_v31 }
 0x1d7   :  { %v447_v52 = vrot.slane %v444_v50, 4 }
 0x1d8   :  { %v457_v46 = vpop.permute.xlu1 %456 }
 0x1d9   :  { %v450_v57 = vsel %vm448_vm3, %v447_v52, %v446_v54  ;;  %vm461_vm4 = vcmp.eq.s32.totalorder %v457_v46, 1  ;;  %v449_v61 = vsel %vm448_vm3, %v446_v54, %v447_v52 }
 0x1da   :  { %v463_v62 = vsel %vm461_vm4, %v450_v57, 0.0 }
 0x1db   :  { %v468_v0 = vmul.f32 %v466_v60, %v463_v62 }
 0x1dd   :  { %v470_v6 = vadd.f32 %v468_v0, %v443_v51 }
 0x1e0   :  { %v460_v53 = vpop.permute.xlu1 %459 }
 0x1e1   :  { %vm462_vm5 = vcmp.eq.s32.totalorder %v460_v53, 1 }
 0x1e2   :  { %v464_v63 = vsel %vm462_vm5, %v449_v61, 0.0 }
 0x1e3   :  { %v469_v1 = vmul.f32 %v466_v60, %v464_v63 }
 0x1e5   :  { %v471_v5 = vadd.f32 %v469_v1, %v444_v50 }
 0x230   :  { %v365_v56 = vpop.xlane.xlu2 %364 }
 0x231   :  { %804 = vrcp.f32 %v365_v56 }
 0x237   :  { %v805_v2 = vpop.eup %804 }
 0x238   :  { %v368_v58 = vpop.xlane.xlu0 %367 }
 0x239   :  { %806 = vrcp.f32 %v368_v58 }
 0x23f   :  { %v807_v47 = vpop.eup %806 }
 0x243   :  { %v382_v59 = vpop.f32.mrf.mxu1 }
 0x244   :  { %v389_v3 = vmul.f32 %v805_v2, %v382_v59 }
 0x246   :  { %v472_v8 = vadd.f32 %v470_v6, %v389_v3 }
 0x24b   :  { %v384_v4 = vpop.f32.mrf.mxu1 }
 0x24c   :  { %v390_v7 = vmul.f32 %v807_v47, %v384_v4 }
 0x24e   :  { %v473_v10 = vadd.f32 %v471_v5, %v390_v7 }
 0x250   :  { %v474_v9 = vpack.c.bf16 %v473_v10, %v472_v8 }
 0x252   :  { %547 = vmatmul.bf16.vlgmr.msrb.gmra.mxu2 %v474_v9 }
 0x2d5   :  { %v548_v11 = vpop.f32.mrf.mxu2 }
 0x2dd   :  { %v550_v12 = vpop.f32.mrf.mxu2 }
 0x2de   :  { %v786_v13 = vpack.c.bf16 %v550_v12, %v548_v11 }
 0x2e0   :  { %787 = vst [vmem:[#allocation7] sm:$0xff] %v786_v13  }
 0x2e1   :  { %569 = dma.vmem_to_hbm [thread:$0]  %s562_s13, 128, %s564_s16, [#allocation4], %s890_s30, %s890_s30, %s891_s6  }
 0x2e2   :  { %884 = dma.done.wait [#allocation4], 128  }
 0x2e3   :  { %885 = vsyncadd [#allocation4], 4294967168 }
 0x2e4   :  { %574 = vsyncpa [#allocation3], 1 }
 0x2e5   :  { %575 = vsyncpa [#allocation6], 1 }
 0x2e6   :  { %576 = vsyncpa [#allocation4], 1 }

</bundles_post_ra>
